<compile_context>
chip_gen: v7x
topology: tpu7x:2x2x1
jax: 0.10.0
libtpu: 0.0.40
codegen_flags: <defaults>
</compile_context>

<pallas_src>
from math import prod

import jax
import jax.numpy as jnp
from jax.experimental import pallas as pl
from jax.experimental.pallas import tpu as pltpu


# ----------------------------------------------------------------------------
# Per-generation budgets
# ----------------------------------------------------------------------------
_BUDGETS = None
_LANE_CAP = 32768
_INT_MAX = 2 ** 31 - 1


def _budgets():
    global _BUDGETS
    if _BUDGETS is None:
        vmem_bytes = 64 * 1024 * 1024
        try:
            info = pltpu.get_tpu_info()
            vmem_bytes = int(getattr(info, "vmem_capacity_bytes", vmem_bytes))
        except Exception:
            pass
        if vmem_bytes >= 100 * 1024 * 1024:
            # v5e / v6e: 128 MiB physical VMEM -> larger blocks, 64 MiB scoped.
            _BUDGETS = {"vmem_limit": 64 << 20,
                        "elem_block": 8 << 20,
                        "reduce_block": 6 << 20}
        else:
            # v7x (64 MiB per TC) or unknown -> conservative.
            _BUDGETS = {"vmem_limit": 32 << 20,
                        "elem_block": 5 << 20,
                        "reduce_block": 3 << 20}
    return _BUDGETS


def _params(semantics):
    return pltpu.CompilerParams(dimension_semantics=semantics,
                                vmem_limit_bytes=_budgets()["vmem_limit"])


def _pick_row_tile(rows, bytes_per_row, max_block_bytes, min_grid=2):
    """Row tile: multiple of 8 (or the full extent).  Grids use pl.cdiv so the
    ragged last block is handled by Pallas -> no divisibility perf cliff."""
    cap = max(1, max_block_bytes // max(1, bytes_per_row))
    if min_grid > 1 and rows > 8:
        # Keep at least `min_grid` grid steps so both v7x TensorCores get work.
        cap = min(cap, -(-rows // min_grid))
    if cap >= rows:
        return rows
    return max(8, (cap // 8) * 8)


def _pick_qtile(Q, D, budget):
    """Lane-dense Q tile (multiple of 128) so the f32 slab D*qtile*4 fits."""
    if D * Q * 4 <= budget or Q < 128:
        return Q
    q = max(1, budget // (D * 4))
    q = max(128, (q // 128) * 128)
    return min(q, Q)


def _pick_lanes(total):
    """Largest multiple-of-128 divisor of `total`, capped at _LANE_CAP."""
    if total % 128:
        return None
    kmax = max(1, min(total // 128, _LANE_CAP // 128))
    for k in range(kmax, 0, -1):
        if total % (k * 128) == 0:
            return k * 128
    return 128


# ----------------------------------------------------------------------------
# Elementwise activations (sigmoid, tanh)
# ----------------------------------------------------------------------------
def _make_elementwise_kernel(fn):
    def kernel(x_ref, o_ref):
        o_ref[...] = fn(x_ref[...]).astype(o_ref.dtype)
    return kernel


def _elementwise_pallas(x, fn):
    if x.size == 0 or x.ndim == 0:
        return fn(x).astype(x.dtype)
    total = x.size
    lanes = _pick_lanes(total)
    pad = 0
    if lanes is None:
        # Odd-sized tensor: pad the flat view to a lane-dense size, process,
        # slice the tail off.  Keeps stores as unmasked `vst`.
        lanes = 1024 if total >= 1024 else 128
        padded = -(-total // lanes) * lanes
        pad = padded - total
        xf = jnp.pad(x.reshape(-1), (0, pad))
        total = padded
    else:
        xf = x.reshape(-1)
    rows = total // lanes
    xf = xf.reshape(rows, lanes)

    tile = _pick_row_tile(rows, lanes * x.dtype.itemsize, _budgets()["elem_block"])
    grid = (pl.cdiv(rows, tile),)
    out = pl.pallas_call(
        _make_elementwise_kernel(fn),
        out_shape=jax.ShapeDtypeStruct((rows, lanes), x.dtype),
        grid_spec=pltpu.PrefetchScalarGridSpec(
            num_scalar_prefetch=0,
            grid=grid,
            in_specs=[pl.BlockSpec((tile, lanes), lambda i: (i, 0))],
            out_specs=pl.BlockSpec((tile, lanes), lambda i: (i, 0)),
        ),
        compiler_params=_params(("parallel",)),
    )(xf)
    out = out.reshape(-1)
    if pad:
        out = out[:x.size]
    return out.reshape(x.shape)


# ----------------------------------------------------------------------------
# Softmax / LogSoftmax over an arbitrary dim
# ----------------------------------------------------------------------------
def _make_softmax_kernel(log):
    def kernel(x_ref, o_ref):
        x = x_ref[...].astype(jnp.float32)          # upcast only this block
        m = jnp.max(x, axis=1, keepdims=True)
        z = x - m
        e = jnp.exp(z)
        s = jnp.sum(e, axis=1, keepdims=True)
        if log:
            out = z - jnp.log(s)
        else:
            inv = pl.reciprocal(s, approx=True)     # EUP slot
            inv = inv * (2.0 - s * inv)             # one Newton step -> ~f32
            out = e * inv
        o_ref[...] = out.astype(o_ref.dtype)
    return kernel


def _legacy_softmax_dim(ndim):
    # PyTorch legacy default when dim is not given.
    return 0 if ndim in (0, 1, 3) else 1


def _softmax_pallas(x, dim, log):
    if x.size == 0:
        return x
    if dim is None:
        dim = _legacy_softmax_dim(x.ndim)
    d = dim % x.ndim
    shape = x.shape
    P = prod(shape[:d])
    D = shape[d]
    Q = prod(shape[d + 1:])
    budget = _budgets()["reduce_block"]

    if Q == 1:
        xf = x.reshape(P, D)
        ptile = _pick_row_tile(P, D * 4, budget)
        grid = (pl.cdiv(P, ptile),)
        in_spec = pl.BlockSpec((ptile, D), lambda i: (i, 0))
        out_spec = pl.BlockSpec((ptile, D), lambda i: (i, 0))
        out_shape = jax.ShapeDtypeStruct((P, D), x.dtype)
        semantics = ("parallel",)
    else:
        xf = x.reshape(P, D, Q)                     # D on sublanes, Q lane-dense
        qtile = _pick_qtile(Q, D, budget)
        ptile = _pick_row_tile(P, D * qtile * 4, budget)
        grid = (pl.cdiv(P, ptile), pl.cdiv(Q, qtile))
        in_spec = pl.BlockSpec((ptile, D, qtile), lambda i, j: (i, 0, j))
        out_spec = pl.BlockSpec((ptile, D, qtile), lambda i, j: (i, 0, j))
        out_shape = jax.ShapeDtypeStruct((P, D, Q), x.dtype)
        semantics = ("parallel", "parallel")

    out = pl.pallas_call(
        _make_softmax_kernel(log),
        out_shape=out_shape,
        grid_spec=pltpu.PrefetchScalarGridSpec(
            num_scalar_prefetch=0, grid=grid,
            in_specs=[in_spec], out_specs=out_spec),
        compiler_params=_params(semantics),
    )(xf)
    return out.reshape(shape)


# ----------------------------------------------------------------------------
# ArgMax (dim or global)
# ----------------------------------------------------------------------------
def _make_argmax_kernel(keepdims, floating):
    def kernel(x_ref, o_ref):
        x = x_ref[...]
        D = x_ref.shape[1]
        m = jnp.max(x, axis=1, keepdims=True)
        idx = jax.lax.broadcasted_iota(jnp.int32, x_ref.shape, 1)
        if floating:
            # NaN-aware: max propagates NaN, so also treat NaN positions as
            # hits -> first NaN index, matching jnp.argmax / torch.argmax.
            hit = (x == m) | (jnp.isnan(x) & jnp.isnan(m))
        else:
            hit = x == m
        cand = jnp.where(hit, idx, jnp.int32(D))
        o_ref[...] = jnp.min(cand, axis=1, keepdims=keepdims)  # first max index
    return kernel


def _global_argmax_pallas(x):
    total = x.size
    if total == 0 or total % 128 != 0:
        # TODO(synk): odd-sized global argmax falls back to XLA (would need a
        # masked lane tail); this path is rare.
        return jnp.argmax(x)

    if jnp.issubdtype(x.dtype, jnp.floating):
        acc_dtype, lowest = jnp.float32, float("-inf")
    elif jnp.issubdtype(x.dtype, jnp.signedinteger):
        acc_dtype, lowest = jnp.int32, int(jnp.iinfo(x.dtype).min)
    else:
        # TODO(synk): bool/unsigned global argmax handled by XLA.
        return jnp.argmax(x)

    lanes = _pick_lanes(total)
    rows = total // lanes
    xf = x.reshape(rows, lanes)

    budget = _budgets()["reduce_block"]
    tile = _pick_row_tile(rows, lanes * max(4, x.dtype.itemsize), budget, min_grid=1)
    grid_n = pl.cdiv(rows, tile)

    def kernel(x_ref, o_ref, m_acc, i_acc):
        i = pl.program_id(0)

        @pl.when(i == 0)
        def _():
            m_acc[...] = jnp.full((1, 1), lowest, acc_dtype)
            i_acc[...] = jnp.zeros((1, 1), jnp.int32)

        r = jax.lax.broadcasted_iota(jnp.int32, x_ref.shape, 0)
        c = jax.lax.broadcasted_iota(jnp.int32, x_ref.shape, 1)
        grow = i * tile + r
        valid = grow < rows                      # mask the ragged tail block
        xv = jnp.where(valid, x_ref[...].astype(acc_dtype),
                       jnp.array(lowest, acc_dtype))
        bmax = jnp.max(jnp.max(xv, axis=1, keepdims=True), axis=0, keepdims=True)
        flat = grow * lanes + c
        cand = jnp.where(valid & (xv == bmax), flat, jnp.int32(_INT_MAX))
        bidx = jnp.min(jnp.min(cand, axis=1, keepdims=True), axis=0, keepdims=True)

        better = bmax > m_acc[...]               # strictly greater -> first-index ties
        m_acc[...] = jnp.where(better, bmax, m_acc[...])
        i_acc[...] = jnp.where(better, bidx, i_acc[...])

        @pl.when(i == pl.num_programs(0) - 1)
        def _():
            o_ref[...] = i_acc[...]

    out = pl.pallas_call(
        kernel,
        out_shape=jax.ShapeDtypeStruct((1, 1), jnp.int32),
        grid_spec=pltpu.PrefetchScalarGridSpec(
            num_scalar_prefetch=0, grid=(grid_n,),
            in_specs=[pl.BlockSpec((tile, lanes), lambda i: (i, 0))],
            out_specs=pl.BlockSpec((1, 1), lambda i: (0, 0)),
            scratch_shapes=[pltpu.VMEM((1, 1), acc_dtype),
                            pltpu.VMEM((1, 1), jnp.int32)]),
        compiler_params=_params(("arbitrary",)),
    )(xf)
    return out.reshape(())


def _argmax_pallas(x, dim):
    if dim is None:
        return _global_argmax_pallas(x)

    d = dim % x.ndim
    shape = x.shape
    P = prod(shape[:d])
    D = shape[d]
    Q = prod(shape[d + 1:])
    out_final_shape = shape[:d] + shape[d + 1:]
    floating = jnp.issubdtype(x.dtype, jnp.floating)
    budget = _budgets()["reduce_block"]
    itemb = max(4, x.dtype.itemsize)

    if Q == 1:
        xf = x.reshape(P, D)
        ptile = _pick_row_tile(P, D * itemb, budget)
        grid = (pl.cdiv(P, ptile),)
        out = pl.pallas_call(
            _make_argmax_kernel(True, floating),
            out_shape=jax.ShapeDtypeStruct((P, 1), jnp.int32),
            grid_spec=pltpu.PrefetchScalarGridSpec(
                num_scalar_prefetch=0, grid=grid,
                in_specs=[pl.BlockSpec((ptile, D), lambda i: (i, 0))],
                out_specs=pl.BlockSpec((ptile, 1), lambda i: (i, 0))),
            compiler_params=_params(("parallel",)),
        )(xf)
    else:
        xf = x.reshape(P, D, Q)
        qtile = _pick_qtile(Q, D, budget)
        ptile = _pick_row_tile(P, D * qtile * itemb, budget)
        grid = (pl.cdiv(P, ptile), pl.cdiv(Q, qtile))
        out = pl.pallas_call(
            _make_argmax_kernel(False, floating),
            out_shape=jax.ShapeDtypeStruct((P, Q), jnp.int32),
            grid_spec=pltpu.PrefetchScalarGridSpec(
                num_scalar_prefetch=0, grid=grid,
                in_specs=[pl.BlockSpec((ptile, D, qtile), lambda i, j: (i, 0, j))],
                out_specs=pl.BlockSpec((ptile, qtile), lambda i, j: (i, j))),
            compiler_params=_params(("parallel", "parallel")),
        )(xf)
    return out.reshape(out_final_shape)


# ----------------------------------------------------------------------------
# The Activation module (mirrors the PyTorch dispatch)
# ----------------------------------------------------------------------------
class Activation:
    _VALID = ('identity', 'sigmoid', 'softmax2d', 'softmax', 'logsoftmax',
              'tanh', 'argmax', 'argmax2d')

    def __init__(self, name, **params):
        if not (name is None or callable(name) or name in self._VALID):
            raise ValueError(
                'Activation should be callable/sigmoid/softmax/logsoftmax/'
                'tanh/None; got {}'.format(name))
        self.name = name
        self.params = params
        if callable(name) and not isinstance(name, str):
            # TODO(synk): user-supplied callables are applied as plain JAX fns
            # (not lowered to Pallas).
            self._callable = name(**params)
        else:
            self._callable = None

    def __call__(self, x):
        name, p = self.name, self.params
        if name is None or name == 'identity':
            return x                               # true pass-through
        if name == 'sigmoid':
            return _elementwise_pallas(x, jax.nn.sigmoid)
        if name == 'tanh':
            return _elementwise_pallas(x, jnp.tanh)
        if name == 'softmax2d':
            # Spec module uses nn.Softmax(dim=1) for 'softmax2d'.
            return _softmax_pallas(x, dim=1, log=False)
        if name == 'softmax':
            return _softmax_pallas(x, dim=p.get('dim', None), log=False)
        if name == 'logsoftmax':
            return _softmax_pallas(x, dim=p.get('dim', None), log=True)
        if name == 'argmax':
            return _argmax_pallas(x, dim=p.get('dim', None))
        if name == 'argmax2d':
            return _argmax_pallas(x, dim=1)
        return self._callable(x)


# ----------------------------------------------------------------------------
# Demo / self-check
# ----------------------------------------------------------------------------
if __name__ == "__main__":
    key = jax.random.PRNGKey(0)
    N, C, H, W = 2, 4, 16, 16
    x = jax.random.normal(key, (N, C, H, W), dtype=jnp.float32)

    checks = []

    out = Activation('identity')(x)
    checks.append(jnp.array_equal(out, x))

    out = jax.block_until_ready(Activation('sigmoid')(x))
    checks.append(jnp.allclose(out, jax.nn.sigmoid(x), atol=1e-5, rtol=1e-5))

    out = jax.block_until_ready(Activation('tanh')(x))
    checks.append(jnp.allclose(out, jnp.tanh(x), atol=1e-5, rtol=1e-5))

    out = jax.block_until_ready(Activation('softmax2d')(x))
    checks.append(jnp.allclose(out, jax.nn.softmax(x, axis=1), atol=1e-5, rtol=1e-5))

    out = jax.block_until_ready(Activation('softmax', dim=-1)(x))
    checks.append(jnp.allclose(out, jax.nn.softmax(x, axis=-1), atol=1e-5, rtol=1e-5))

    out = jax.block_until_ready(Activation('logsoftmax', dim=1)(x))
    checks.append(jnp.allclose(out, jax.nn.log_softmax(x, axis=1), atol=1e-5, rtol=1e-5))

    out = jax.block_until_ready(Activation('argmax2d')(x))
    checks.append(jnp.array_equal(out, jnp.argmax(x, axis=1)))

    out = jax.block_until_ready(Activation('argmax', dim=-1)(x))
    checks.append(jnp.array_equal(out, jnp.argmax(x, axis=-1)))

    out = jax.block_until_ready(Activation('argmax', dim=2)(x))
    checks.append(jnp.array_equal(out, jnp.argmax(x, axis=2)))

    out = jax.block_until_ready(Activation('argmax')(x))
    checks.append(jnp.array_equal(out, jnp.argmax(x)))

    # Odd-sized tensor exercises the padded lane-dense fallback.
    x_odd = jax.random.normal(jax.random.PRNGKey(1), (3, 5, 7, 11), dtype=jnp.float32)
    out = jax.block_until_ready(Activation('sigmoid')(x_odd))
    checks.append(jnp.allclose(out, jax.nn.sigmoid(x_odd), atol=1e-5, rtol=1e-5))

    out = jax.block_until_ready(Activation(lambda: jnp.abs)(x))
    checks.append(jnp.allclose(out, jnp.abs(x)))

    assert all(bool(c) for c in checks), "mismatch vs JAX reference"
    print("KERNEL_OK")
</pallas_src>

<mosaic_0001>
module attributes {stable_mosaic.version = 11 : i64} {
  func.func @kernel(%arg0: i32, %arg1: memref<1x2048xf32, #tpu.memory_space<vmem>>, %arg2: memref<1x2048xf32, #tpu.memory_space<vmem>>) attributes {dimension_semantics = [#tpu.dimension_semantics<parallel>], iteration_bounds = array<i64: 1>, scalar_prefetch = 0 : i64, scratch_operands = 0 : i64, tpu.core_type = #tpu.core_type<tc>, window_params = [{transform_indices = @transform_0, window_bounds = array<i64: 1, 2048>}, {transform_indices = @transform_1, window_bounds = array<i64: 1, 2048>}]} {
    %c0 = arith.constant 0 : index
    %c0_0 = arith.constant 0 : index
    %0 = vector.load %arg1[%c0, %c0_0] : memref<1x2048xf32, #tpu.memory_space<vmem>>, vector<1x2048xf32>
    %1 = arith.negf %0 : vector<1x2048xf32>
    %2 = math.exp %1 : vector<1x2048xf32>
    %cst = arith.constant 1.000000e+00 : f32
    %3 = vector.broadcast %cst : f32 to vector<1x2048xf32>
    %4 = arith.addf %3, %2 : vector<1x2048xf32>
    %5 = arith.divf %3, %4 : vector<1x2048xf32>
    %c0_1 = arith.constant 0 : index
    %c0_2 = arith.constant 0 : index
    %6 = vector.load %arg2[%c0_1, %c0_2] : memref<1x2048xf32, #tpu.memory_space<vmem>>, vector<1x2048xf32>
    tpu.vector_store %arg2[%c0_1, %c0_2], %5 {strides = array<i32>} : memref<1x2048xf32, #tpu.memory_space<vmem>>, vector<1x2048xf32>,
    return
  }
  func.func @transform_0(%arg0: i32) -> (i32, i32) {
    %c0_i32 = arith.constant 0 : i32
    %c0_i32_0 = arith.constant 0 : i32
    return %arg0, %c0_i32 : i32, i32
  }
  func.func @transform_1(%arg0: i32) -> (i32, i32) {
    %c0_i32 = arith.constant 0 : i32
    %c0_i32_0 = arith.constant 0 : i32
    return %arg0, %c0_i32 : i32, i32
  }
}

</mosaic_0001>

<bundles_post_ra>
// kernel: tpu_custom_call.1
= control target key start
LH: loop header
LB: loop body
LE: loop exit
PB: predicated region body
PF: predicated region fallthrough
CT: control target
= control target key end

     0   :  { %6 = vsyncpa [#allocation3], 0  ;;  %s148_s0 = inlined_call_operand.hbm [shape: f32[1,2048], index: 0, kind: input, shape index: {}]   ;;  %s149_s1 = inlined_call_operand.hbm [shape: f32[1,2048], index: 1, kind: output, shape index: {}]  }
   0x1   :  { %7 = vsyncpa [#allocation4], 0  ;;  %s112_s6 = smov [#allocation2]   ;;  %s64_s10 = scalar_lea.hbm %s148_s0, 256 }
   0x2   :  { %s14_s7 = sshll.u32 %s112_s6, 4  ;;  %p65_p0 = scmp.ne.s32.totalorder %s148_s0, %s64_s10  ;;  %s15_s7 = int_to_ptr.vmem [resolvable:$true] %s14_s7 }
   0x3   :  { %p68_p1 = scmp.lt.u32.totalorder %s64_s10, %s148_s0 }
   0x5   :  { %p70_p2 = pnand %p68_p1, %p65_p0 }
   0x7   :  { %73 = shalt.err (!%p70_p2)
}
   0x8   :  { %s74_s15 = scalar_lea.vmem %s15_s7, 256  ;;  %p79_p4 = scmp.lt.s32.totalorder %s15_s7, %s15_s7 }
   0x9   :  { %p75_p3 = scmp.ne.s32.totalorder %s15_s7, %s74_s15  ;;  %p80_p5 = scmp.lt.s32.totalorder %s74_s15, %s74_s15 }
   0xb   :  { %p81_p6 = por %p80_p5, %p79_p4 }
   0xd   :  { %p82_p7 = pnand %p81_p6, %p75_p3 }
   0xf   :  { %85 = shalt.err (!%p82_p7)
}
  0x10   :  { %17 = dma.hbm_to_vmem [thread:$0]  %s148_s0, 256, %s15_s7, [#allocation3]  }
  0x11   :  { %108 = dma.done.wait [#allocation3], 256  }
  0x12   :  { %109 = vsyncadd [#allocation3], 4294967040  ;;  %v21_v0 = vld [vmem:[#allocation2] sm:$0xff]  ;;  %v22_v1 = vld [vmem:[#allocation2 + $0x8] sm:$0xff]  ;;  %s113_s18 = smov [#allocation5]  }
  0x13   :  { %v52_v2 = vmul.f32 -1.442695, %v21_v0  ;;  %v53_v3 = vmul.f32 -1.442695, %v22_v1  ;;  %s43_s19 = sshll.u32 %s113_s18, 4  ;;  %s44_s19 = int_to_ptr.vmem [resolvable:$true] %s43_s19 }
  0x14   :  { %s86_s0 = scalar_lea.vmem %s44_s19, 256  ;;  %p91_p9 = scmp.lt.s32.totalorder %s44_s19, %s44_s19 }
  0x15   :  { %56 = vpow2.f32 %v52_v2  ;;  %p87_p8 = scmp.ne.s32.totalorder %s44_s19, %s86_s0  ;;  %p92_p10 = scmp.lt.s32.totalorder %s86_s0, %s86_s0 }
  0x16   :  { %58 = vpow2.f32 %v53_v3 }
  0x17   :  { %p93_p11 = por %p92_p10, %p91_p9 }
  0x19   :  { %p94_p12 = pnand %p93_p11, %p87_p8 }
  0x1f   :  { %v57_v4 = vpop.eup %56 }
  0x20   :  { %v59_v5 = vpop.eup %58  ;;  %v29_v6 = vadd.f32 1.0, %v57_v4 }
  0x21   :  { %v30_v7 = vadd.f32 1.0, %v59_v5 }
  0x22   :  { %60 = vrcp.f32 %v29_v6 }
  0x23   :  { %62 = vrcp.f32 %v30_v7 }
  0x2c   :  { %v61_v8 = vpop.eup %60 }
  0x2d   :  { %v63_v9 = vpop.eup %62  ;;  %35 = vst [vmem:[#allocation5] sm:$0xff] %v61_v8 }
  0x2e   :  { %36 = vst [vmem:[#allocation5 + $0x8] sm:$0xff] %v63_v9 }
  0x2f   :  { %97 = shalt.err (!%p94_p12)
}
  0x30   :  { %s98_s22 = scalar_lea.hbm %s149_s1, 256 }
  0x31   :  { %p99_p13 = scmp.ne.s32.totalorder %s149_s1, %s98_s22  ;;  %p102_p0 = scmp.lt.u32.totalorder %s98_s22, %s149_s1 }
  0x33   :  { %p104_p1 = pnand %p102_p0, %p99_p13 }
  0x35   :  { %107 = shalt.err (!%p104_p1)
}
  0x36   :  { %46 = dma.vmem_to_hbm [thread:$0]  %s44_s19, 256, %s149_s1, [#allocation4]  }
  0x37   :  { %110 = dma.done.wait [#allocation4], 256  }
  0x38   :  { %111 = vsyncadd [#allocation4], 4294967040 }
  0x39   :  { %50 = vsyncpa [#allocation3], 1 }
  0x3a   :  { %51 = vsyncpa [#allocation4], 1 }

</bundles_post_ra>
